<compile_context>
chip_gen: v7x
topology: tpu7x:2x2x1
jax: 0.10.0
libtpu: 0.0.40
codegen_flags: <defaults>
</compile_context>

<pallas_src>
import jax
import jax.numpy as jnp
from jax import lax
from jax.experimental import pallas as pl
from jax.experimental.pallas import tpu as pltpu


_LANE = 128
_SUBLANE = 8
_NEG_INF = -1e30


def _round_up(x, m):
    return ((x + m - 1) // m) * m


def _make_ce_kernel(num_classes):
    """Kernel closure over the real (unpadded) number of classes."""

    def kernel(x_ref, w_ref, b_ref, y_ref, part_ref):
        # encoder: logits = x @ W + b   (MXU, bf16 inputs, f32 accumulate)
        logits = jnp.dot(
            x_ref[...], w_ref[...], preferred_element_type=jnp.float32
        ) + b_ref[...]                                           # (TB, C_pad)

        tb, c_pad = logits.shape
        col = lax.broadcasted_iota(jnp.int32, (tb, c_pad), 1)    # (TB, C_pad)

        # mask lane-padded class columns out of the softmax
        logits = jnp.where(col < num_classes, logits, _NEG_INF)

        # log-softmax (f32; exp/log on the EUP)
        m = jnp.max(logits, axis=-1, keepdims=True)              # (TB, 1)
        shifted = logits - m
        lse = jnp.log(jnp.sum(jnp.exp(shifted), axis=-1, keepdims=True))
        logp = shifted - lse                                     # (TB, C_pad)

        # gather target log-prob: col == label; padded rows have label -1
        # and therefore match nothing (contribute 0 to the sum).
        tgt = col == y_ref[...]                                  # (TB, C_pad)
        nll = -jnp.sum(jnp.where(tgt, logp, 0.0))                # scalar

        # per-tile partial sum written to a lane-dense (8,128) block
        part_ref[...] = jnp.zeros((_SUBLANE, _LANE), jnp.float32) + nll

    return kernel


def framework_forward(x, w, b, y, *, tb_max=256):
    """Compute CrossEntropyLoss(Linear(x), y) (mean reduction) via Pallas.

    x: (B, D) float32, w: (D, C) float32, b: (C,) float32, y: (B,) int32
    returns: scalar float32 loss
    """
    B, D = x.shape
    C = w.shape[1]

    # lane/sublane-friendly padded sizes
    D_pad = _round_up(D, _LANE)
    C_pad = _round_up(C, _LANE)
    B8 = _round_up(B, _SUBLANE)
    TB = min(_round_up(tb_max, _SUBLANE), B8)   # batch tile (multiple of 8)
    B_pad = _round_up(B, TB)
    n_tiles = B_pad // TB

    # pad inputs (zeros contribute nothing to the matmul; labels of padded
    # rows are -1 so they never match a class index)
    x_p = jnp.zeros((B_pad, D_pad), jnp.bfloat16).at[:B, :D].set(
        x.astype(jnp.bfloat16))
    w_p = jnp.zeros((D_pad, C_pad), jnp.bfloat16).at[:D, :C].set(
        w.astype(jnp.bfloat16))
    b_p = jnp.zeros((1, C_pad), jnp.float32).at[0, :C].set(
        b.astype(jnp.float32))
    y_p = jnp.full((B_pad, 1), -1, dtype=jnp.int32).at[:B, 0].set(
        y.astype(jnp.int32))

    cost = pl.CostEstimate(
        flops=2 * B_pad * D_pad * C_pad,
        transcendentals=B_pad * C_pad,
        bytes_accessed=(x_p.size * 2 + w_p.size * 2 + b_p.size * 4
                        + y_p.size * 4 + n_tiles * _SUBLANE * _LANE * 4),
    )

    partials = pl.pallas_call(
        _make_ce_kernel(C),
        out_shape=jax.ShapeDtypeStruct((n_tiles * _SUBLANE, _LANE),
                                       jnp.float32),
        grid_spec=pltpu.PrefetchScalarGridSpec(
            num_scalar_prefetch=0,
            grid=(n_tiles,),
            in_specs=[
                pl.BlockSpec((TB, D_pad), lambda i: (i, 0)),      # x tile
                pl.BlockSpec((D_pad, C_pad), lambda i: (0, 0)),   # W (resident)
                pl.BlockSpec((1, C_pad), lambda i: (0, 0)),       # bias
                pl.BlockSpec((TB, 1), lambda i: (i, 0)),          # labels
            ],
            out_specs=pl.BlockSpec((_SUBLANE, _LANE), lambda i: (i, 0)),
        ),
        compiler_params=pltpu.CompilerParams(
            dimension_semantics=("parallel",)),
        cost_estimate=cost,
    )(x_p, w_p, b_p, y_p)

    # tiny finalize in plain JAX: sum per-tile partials, divide by the TRUE B
    per_tile = partials.reshape(n_tiles, _SUBLANE, _LANE)[:, 0, 0]
    return jnp.sum(per_tile) / jnp.float32(B)


if __name__ == "__main__":
    key = jax.random.PRNGKey(0)
    kx, kw, kb, ky = jax.random.split(key, 4)

    B, D, C = 8, 32, 16  # batch, feature dim, num classes

    x = jax.random.normal(kx, (B, D), dtype=jnp.float32)
    # deterministic encoder params (synthetic "Linear(D, C)" weights)
    w = jax.random.normal(kw, (D, C), dtype=jnp.float32) * 0.1
    b = jax.random.normal(kb, (C,), dtype=jnp.float32) * 0.1
    y = jax.random.randint(ky, (B,), 0, C, dtype=jnp.int32)

    loss = framework_forward(x, w, b, y)
    jax.block_until_ready(loss)

    # reference in plain JAX using the same bf16-input / f32-accumulate matmul
    logits_ref = jnp.dot(x.astype(jnp.bfloat16), w.astype(jnp.bfloat16),
                         preferred_element_type=jnp.float32) + b
    logp_ref = jax.nn.log_softmax(logits_ref, axis=-1)
    loss_ref = -jnp.mean(logp_ref[jnp.arange(B), y])

    assert jnp.allclose(loss, loss_ref, atol=1e-4, rtol=1e-4), (loss, loss_ref)
    print("KERNEL_OK")
</pallas_src>

<mosaic_0001>
module attributes {stable_mosaic.version = 11 : i64} {
  func.func @kernel(%arg0: i32, %arg1: memref<8x128xbf16, #tpu.memory_space<vmem>>, %arg2: memref<128x128xbf16, #tpu.memory_space<vmem>>, %arg3: memref<1x128xf32, #tpu.memory_space<vmem>>, %arg4: memref<8x1xi32, #tpu.memory_space<vmem>>, %arg5: memref<8x128xf32, #tpu.memory_space<vmem>>) attributes {dimension_semantics = [#tpu.dimension_semantics<parallel>], iteration_bounds = array<i64: 1>, scalar_prefetch = 0 : i64, scratch_operands = 0 : i64, tpu.core_type = #tpu.core_type<tc>, window_params = [{transform_indices = @transform_0, window_bounds = array<i64: 8, 128>}, {pipeline_mode = #tpu.pipeline_mode<synchronous>, transform_indices = @transform_1, window_bounds = array<i64: 128, 128>}, {pipeline_mode = #tpu.pipeline_mode<synchronous>, transform_indices = @transform_2, window_bounds = array<i64: 1, 128>}, {transform_indices = @transform_3, window_bounds = array<i64: 8, 1>}, {transform_indices = @transform_4, window_bounds = array<i64: 8, 128>}]} {
    %c0 = arith.constant 0 : index
    %c0_0 = arith.constant 0 : index
    %0 = vector.load %arg1[%c0, %c0_0] : memref<8x128xbf16, #tpu.memory_space<vmem>>, vector<8x128xbf16>
    %c0_1 = arith.constant 0 : index
    %c0_2 = arith.constant 0 : index
    %1 = vector.load %arg2[%c0_1, %c0_2] : memref<128x128xbf16, #tpu.memory_space<vmem>>, vector<128x128xbf16>
    %cst = arith.constant dense<0.000000e+00> : vector<8x128xf32>
    %2 = tpu.matmul %0, %1, %cst {dimension_numbers = #tpu.dot_dimension_numbers<[1], [0], [0], [1], [0, 0, 1, 1], [], []>} : vector<8x128xbf16>, vector<128x128xbf16>, vector<8x128xf32> -> vector<8x128xf32>
    %c0_3 = arith.constant 0 : index
    %c0_4 = arith.constant 0 : index
    %3 = vector.load %arg3[%c0_3, %c0_4] : memref<1x128xf32, #tpu.memory_space<vmem>>, vector<1x128xf32>
    %4 = vector.broadcast %3 : vector<1x128xf32> to vector<8x128xf32>
    %5 = arith.addf %2, %4 : vector<8x128xf32>
    %6 = tpu.iota {dimensions = array<i32: 1>} : vector<8x128xi32>
    %c16_i32 = arith.constant 16 : i32
    %7 = vector.broadcast %c16_i32 : i32 to vector<8x128xi32>
    %8 = arith.cmpi slt, %6, %7 : vector<8x128xi32>
    %cst_5 = arith.constant -1.000000e+30 : f32
    %9 = vector.broadcast %cst_5 : f32 to vector<8x128xf32>
    %10 = arith.select %8, %5, %9 : vector<8x128xi1>, vector<8x128xf32>
    %cst_6 = arith.constant dense<0xFF800000> : vector<8xf32>
    %11 = vector.multi_reduction <maximumf>, %10, %cst_6 [1] : vector<8x128xf32> to vector<8xf32>
    %12 = vector.shape_cast %11 : vector<8xf32> to vector<8x1xf32>
    %13 = vector.broadcast %12 : vector<8x1xf32> to vector<8x128xf32>
    %14 = arith.subf %10, %13 : vector<8x128xf32>
    %15 = math.exp %14 : vector<8x128xf32>
    %cst_7 = arith.constant dense<0.000000e+00> : vector<8xf32>
    %16 = vector.multi_reduction <add>, %15, %cst_7 [1] : vector<8x128xf32> to vector<8xf32>
    %17 = vector.shape_cast %16 : vector<8xf32> to vector<8x1xf32>
    %18 = math.log %17 : vector<8x1xf32>
    %19 = vector.broadcast %18 : vector<8x1xf32> to vector<8x128xf32>
    %20 = arith.subf %14, %19 : vector<8x128xf32>
    %c0_8 = arith.constant 0 : index
    %c0_9 = arith.constant 0 : index
    %21 = vector.load %arg4[%c0_8, %c0_9] : memref<8x1xi32, #tpu.memory_space<vmem>>, vector<8x1xi32>
    %22 = vector.broadcast %21 : vector<8x1xi32> to vector<8x128xi32>
    %23 = arith.cmpi eq, %6, %22 : vector<8x128xi32>
    %cst_10 = arith.constant 0.000000e+00 : f32
    %24 = vector.broadcast %cst_10 : f32 to vector<8x128xf32>
    %25 = arith.select %23, %20, %24 : vector<8x128xi1>, vector<8x128xf32>
    %26 = vector.shape_cast %25 : vector<8x128xf32> to vector<1x8x128xf32>
    %cst_11 = arith.constant dense<0.000000e+00> : vector<1xf32>
    %27 = vector.multi_reduction <add>, %26, %cst_11 [1, 2] : vector<1x8x128xf32> to vector<1xf32>
    %28 = vector.shape_cast %27 : vector<1xf32> to vector<1x1x1xf32>
    %29 = vector.extract %28[0, 0, 0] : f32 from vector<1x1x1xf32>
    %cst_12 = arith.constant 0.000000e+00 : f32
    %30 = arith.subf %cst_12, %29 : f32
    %cst_13 = arith.constant 0.000000e+00 : f32
    %31 = vector.broadcast %cst_13 : f32 to vector<8x128xf32>
    %32 = vector.broadcast %30 : f32 to vector<8x128xf32>
    %33 = arith.addf %31, %32 : vector<8x128xf32>
    %c0_14 = arith.constant 0 : index
    %c0_15 = arith.constant 0 : index
    %34 = vector.load %arg5[%c0_14, %c0_15] : memref<8x128xf32, #tpu.memory_space<vmem>>, vector<8x128xf32>
    tpu.vector_store %arg5[%c0_14, %c0_15], %33 {strides = array<i32>} : memref<8x128xf32, #tpu.memory_space<vmem>>, vector<8x128xf32>,
    return
  }
  func.func @transform_0(%arg0: i32) -> (i32, i32) {
    %c0_i32 = arith.constant 0 : i32
    %c0_i32_0 = arith.constant 0 : i32
    return %arg0, %c0_i32 : i32, i32
  }
  func.func @transform_1(%arg0: i32) -> (i32, i32) {
    %c0_i32 = arith.constant 0 : i32
    %c0_i32_0 = arith.constant 0 : i32
    %c0_i32_1 = arith.constant 0 : i32
    return %c0_i32, %c0_i32_0 : i32, i32
  }
  func.func @transform_2(%arg0: i32) -> (i32, i32) {
    %c0_i32 = arith.constant 0 : i32
    %c0_i32_0 = arith.constant 0 : i32
    %c0_i32_1 = arith.constant 0 : i32
    return %c0_i32, %c0_i32_0 : i32, i32
  }
  func.func @transform_3(%arg0: i32) -> (i32, i32) {
    %c0_i32 = arith.constant 0 : i32
    %c0_i32_0 = arith.constant 0 : i32
    return %arg0, %c0_i32 : i32, i32
  }
  func.func @transform_4(%arg0: i32) -> (i32, i32) {
    %c0_i32 = arith.constant 0 : i32
    %c0_i32_0 = arith.constant 0 : i32
    return %arg0, %c0_i32 : i32, i32
  }
}

</mosaic_0001>

<bundles_post_ra>
// kernel: tpu_custom_call.1
= control target key start
LH: loop header
LB: loop body
LE: loop exit
PB: predicated region body
PF: predicated region fallthrough
CT: control target
= control target key end

     0   :  { %9 = vsyncpa [#allocation3], 0  ;;  %s367_s0 = inlined_call_operand.vmem [shape: bf16[8,128], index: 0, kind: input, shape index: {}]   ;;  %s368_s1 = inlined_call_operand.hbm [shape: bf16[128,128], index: 1, kind: input, shape index: {}]   ;;  %s369_s2 = inlined_call_operand.vmem [shape: f32[1,128], index: 2, kind: input, shape index: {}]   ;;  %s370_s3 = inlined_call_operand.vmem [shape: s32[8,1], index: 3, kind: input, shape index: {}]   ;;  %s371_s4 = inlined_call_operand.hbm [shape: f32[8,128], index: 4, kind: output, shape index: {}]  }
   0x1   :  { %10 = vsyncpa [#allocation4], 0  ;;  %s302_s15 = smov [#allocation2]   ;;  %s254_s19 = scalar_lea.hbm %s368_s1, 1024 }
   0x2   :  { %s18_s16 = sshll.u32 %s302_s15, 4  ;;  %p255_p0 = scmp.ne.s32.totalorder %s368_s1, %s254_s19  ;;  %s19_s16 = int_to_ptr.vmem [resolvable:$true] %s18_s16 }
   0x3   :  { %p258_p1 = scmp.lt.u32.totalorder %s254_s19, %s368_s1 }
   0x5   :  { %p260_p2 = pnand %p258_p1, %p255_p0 }
   0x7   :  { %263 = shalt.err (!%p260_p2)
}
   0x8   :  { %s264_s24 = scalar_lea.vmem %s19_s16, 1024  ;;  %p269_p4 = scmp.lt.s32.totalorder %s19_s16, %s19_s16 }
   0x9   :  { %p265_p3 = scmp.ne.s32.totalorder %s19_s16, %s264_s24  ;;  %p270_p5 = scmp.lt.s32.totalorder %s264_s24, %s264_s24 }
   0xb   :  { %p271_p6 = por %p270_p5, %p269_p4 }
   0xd   :  { %p272_p7 = pnand %p271_p6, %p265_p3 }
   0xf   :  { %275 = shalt.err (!%p272_p7)
}
  0x10   :  { %s303_s25 = smov 64   ;;  %s304_s26 = smov 4  }
  0x11   :  { %24 = dma.hbm_to_vmem [thread:$0]  %s368_s1, 1024, %s19_s16, [#allocation3], %s303_s25, %s303_s25, %s304_s26  }
  0x12   :  { %298 = dma.done.wait [#allocation3], 1024  }
  0x13   :  { %299 = vsyncadd [#allocation3], 4294966272  ;;  %v305_v0 = vmov 0.0   ;;  %vm306_vm0 = vmmov 0   ;;  %v242_v1 = vld [vmem:[#allocation2] sm:$0xff]   ;;  %v243_v2 = vld [vmem:[#allocation2 + $0x8] sm:$0xff]   ;;  %v145_v10 = vlaneseq }
  0x14   :  { %211 = vmatprep.subr.bf16.mxu0 %v305_v0  ;;  %227 = vmatprep.mubr.msk.bf16.mxu0 %vm306_vm0, %v305_v0  ;;  %v244_v3 = vld [vmem:[#allocation2 + $0x10] sm:$0xff]   ;;  %v245_v4 = vld [vmem:[#allocation2 + $0x18] sm:$0xff]   ;;  %v246_v5 = vld [vmem:[#allocation2 + $0x20] sm:$0xff]   ;;  %v307_v20 = vmov 0  }
  0x15   :  { %212 = vmatpush3.bf16.msra.mxu0 %v242_v1  ;;  %v247_v6 = vld [vmem:[#allocation2 + $0x28] sm:$0xff]   ;;  %v248_v7 = vld [vmem:[#allocation2 + $0x30] sm:$0xff]   ;;  %v249_v8 = vld [vmem:[#allocation2 + $0x38] sm:$0xff]   ;;  %v146_v11 = vand.u32 127, %v145_v10  ;;  %240 = vset.pattern.permute.xlu1 %v307_v20 }
  0x16   :  { %213 = vmatprep.subr.bf16.mxu0 %v305_v0  ;;  %v33_v9 = vld [vmem:[%s367_s0] sm:$0xf]  ;;  %241 = vset.pattern.permute.xlu0 %v307_v20  ;;  %s308_s0 = smov [#allocation5]  }
  0x17   :  { %v193_v12 = vld [vmem:[%s369_s2] ss:$0 sm:$0xff]  ;;  %vm147_vm1 = vcmp.lt.s32.totalorder %v146_v11, 16  ;;  %s184_s2 = sshll.u32 %s308_s0, 4  ;;  %s185_s2 = int_to_ptr.vmem [resolvable:$true] %s184_s2 }
  0x18   :  { %v159_v19 = vld [vmem:[%s370_s3] sm:$0xff]  ;;  %s276_s9 = scalar_lea.vmem %s185_s2, 128  ;;  %p281_p9 = scmp.lt.s32.totalorder %s185_s2, %s185_s2 }
  0x19   :  { %214 = vmatpush3.bf16.msra.mxu0 %v243_v2  ;;  %161 = vperm.xlu1 %240, %v159_v19   ;;  %p277_p8 = scmp.ne.s32.totalorder %s185_s2, %s276_s9  ;;  %p282_p10 = scmp.lt.s32.totalorder %s276_s9, %s276_s9 }
  0x1a   :  { %215 = vmatprep.subr.bf16.mxu0 %v305_v0 }
  0x1b   :  { %p283_p11 = por %p282_p10, %p281_p9 }
  0x1d   :  { %216 = vmatpush3.bf16.msra.mxu0 %v244_v3  ;;  %p284_p12 = pnand %p283_p11, %p277_p8 }
  0x1e   :  { %217 = vmatprep.subr.bf16.mxu0 %v305_v0 }
  0x21   :  { %218 = vmatpush3.bf16.msra.mxu0 %v245_v4 }
  0x22   :  { %219 = vmatprep.subr.bf16.mxu0 %v305_v0 }
  0x25   :  { %220 = vmatpush3.bf16.msra.mxu0 %v246_v5 }
  0x26   :  { %221 = vmatprep.subr.bf16.mxu0 %v305_v0 }
  0x29   :  { %222 = vmatpush3.bf16.msra.mxu0 %v247_v6 }
  0x2a   :  { %223 = vmatprep.subr.bf16.mxu0 %v305_v0 }
  0x2d   :  { %224 = vmatpush3.bf16.msra.mxu0 %v248_v7 }
  0x2e   :  { %225 = vmatprep.subr.bf16.mxu0 %v305_v0 }
  0x31   :  { %226 = vmatpush3.bf16.msra.mxu0 %v249_v8 }
  0x34   :  { %228 = vmatmul.mubr.bf16.vlgmr.msra.gmra.mrb[0].mxu0 %v33_v9 }
  0x98   :  { %v162_v26 = vpop.permute.xlu1 %161 }
  0x99   :  { %vm163_vm2 = vcmp.eq.s32.totalorder %v146_v11, %v162_v26 }
 0x107   :  { %v139_v13 = vpop.f32.mrb[0].mxu0 }
 0x108   :  { %v140_v14 = vadd.f32 %v193_v12, %v139_v13  ;;  %v229_v15 = vpop.f32.mrb[1].mxu0 }
 0x109   :  { %v142_v16 = vpop.f32.mrb[2].mxu0 }
 0x10a   :  { %v230_v17 = vpop.f32.mrb[3].mxu0  ;;  %v148_v18 = vsel %vm147_vm1, %v140_v14, -1e+30 }
 0x10b   :  { %149 = vmax.xlane.f32.xlu0 %v148_v18 }
 0x198   :  { %v150_v21 = vpop.xlane.xlu0 %149 }
 0x199   :  { %v151_v22 = vsub.f32 %v148_v18, %v150_v21 }
 0x19b   :  { %v152_v23 = vmul.f32 1.442695, %v151_v22 }
 0x19d   :  { %250 = vpow2.f32 %v152_v23 }
 0x1a7   :  { %v251_v24 = vpop.eup %250 }
 0x1a8   :  { %154 = vadd.xlane.f32.xlu0 %v251_v24 }
 0x235   :  { %v155_v25 = vpop.xlane.xlu0 %154 }
 0x236   :  { %252 = vlog2.f32 %v155_v25 }
 0x240   :  { %v253_v27 = vpop.eup %252 }
 0x241   :  { %v157_v28 = vmul.f32 0.6931472, %v253_v27 }
 0x243   :  { %v158_v29 = vsub.f32 %v151_v22, %v157_v28 }
 0x245   :  { %v164_v30 = vsel %vm163_vm2, %v158_v29, 0.0 }
 0x246   :  { %165 = vadd.xlane.f32.xlu1 %v164_v30 }
 0x2d3   :  { %v166_v31 = vpop.xlane.xlu1 %165 }
 0x2d4   :  { %v167_v32 = vrot.slane %v166_v31, 4 }
 0x2d6   :  { %v168_v33 = vadd.f32 %v167_v32, %v166_v31 }
 0x2d8   :  { %v169_v34 = vrot.slane %v168_v33, 2 }
 0x2da   :  { %v170_v35 = vadd.f32 %v169_v34, %v168_v33 }
 0x2dc   :  { %v171_v36 = vrot.slane %v170_v35, 1 }
 0x2de   :  { %v172_v37 = vadd.f32 %v171_v36, %v170_v35 }
 0x2e0   :  { %231 = vpush %v172_v37 }
 0x311   :  { %s232_s3 = spop %231 }
 0x312   :  { %s174_s8 = ssub.f32 0.0, %s232_s3 }
 0x314   :  { %v175_v38 = vstv %s174_s8 }
 0x315   :  { %177 = vst [vmem:[#allocation5] sm:$0xff] %v175_v38 }
 0x316   :  { %287 = shalt.err (!%p284_p12)
}
 0x317   :  { %s288_s12 = scalar_lea.hbm %s371_s4, 128 }
 0x318   :  { %p289_p13 = scmp.ne.s32.totalorder %s371_s4, %s288_s12  ;;  %p292_p0 = scmp.lt.u32.totalorder %s288_s12, %s371_s4 }
 0x31a   :  { %p294_p1 = pnand %p292_p0, %p289_p13 }
 0x31c   :  { %297 = shalt.err (!%p294_p1)
}
 0x31d   :  { %187 = dma.vmem_to_hbm [thread:$0]  %s185_s2, 128, %s371_s4, [#allocation4]  }
 0x31e   :  { %300 = dma.done.wait [#allocation4], 128  }
 0x31f   :  { %301 = vsyncadd [#allocation4], 4294967168 }
 0x320   :  { %191 = vsyncpa [#allocation3], 1 }
 0x321   :  { %192 = vsyncpa [#allocation4], 1 }

</bundles_post_ra>
